<compile_context>
chip_gen: v5e
topology: v5e:2x2
jax: 0.10.0
libtpu: 0.0.40
codegen_flags: <defaults>
</compile_context>

<pallas_src>
import functools

import jax
import jax.numpy as jnp
from jax.experimental import pallas as pl
from jax.experimental.pallas import tpu as pltpu


def _round_up(x, m):
    return ((x + m - 1) // m) * m


def _cdiv(a, b):
    return -(-a // b)


def _baseconv_kernel(x_ref, w_ref, b_ref, o_ref, *, K, stride, TH):
    # x_ref: (1, TH_in, Wo, KC)  bf16 row tile (halo rows included, kw taps +
    #                            W-stride already folded into the KC lane dim)
    # w_ref: (K, KC, TC)         bf16 weights, BN scale pre-folded
    # b_ref: (1, TC)             f32 folded BN bias
    # o_ref: (1, TH*Wo, TC)      flat, lane-dense output tile
    _, TH_in, Wo, KC = x_ref.shape
    TC = o_ref.shape[-1]

    acc = jnp.zeros((TH * Wo, TC), jnp.float32)
    # Short static loop over the kh taps only; kw is already in the
    # contraction dim, so each iteration is one (TH*Wo, K*Cin) x (K*Cin, TC)
    # MXU matmul with f32 accumulation.
    for kh in range(K):
        if stride == 1:
            rows = x_ref[0, pl.ds(kh, TH), :, :]                  # (TH, Wo, KC)
        else:
            # Strided row selection along a leading (non-lane/sublane) dim.
            span = (TH - 1) * stride + 1
            rows = x_ref[0, pl.ds(kh, span), :, :][::stride]      # (TH, Wo, KC)
        patch = rows.reshape(TH * Wo, KC)
        acc = acc + jnp.dot(patch, w_ref[kh],
                            preferred_element_type=jnp.float32)

    # Epilogue in f32: folded BN bias (scale already in weights) + SiLU.
    y = acc + b_ref[0]
    y = y * jax.nn.sigmoid(y)
    o_ref[0] = y.astype(o_ref.dtype)


def base_conv(x_nchw, weight_oihw, gamma, beta, running_mean, running_var,
              *, stride=1, eps=1e-5):
    """BaseConv forward: conv2d(no bias, pad=(k-1)//2) -> BN(eval) -> SiLU.

    x_nchw: (N, Cin, H, W), PyTorch layout. Returns (N, Cout, Ho, Wo).
    """
    N, Cin, H, W = x_nchw.shape
    Cout, Cin_w, K, K2 = weight_oihw.shape
    assert K == K2
    assert Cin_w == Cin  # TODO(synk): grouped conv (groups != 1) not supported
    pad = (K - 1) // 2

    Ho = (H + 2 * pad - K) // stride + 1
    Wo = (W + 2 * pad - K) // stride + 1
    Hp = H + 2 * pad

    # ---- channel padding: lane-dense Cout, sublane-friendly Cin ----
    LANE = 128
    Cin_p = _round_up(Cin, 8)
    Cout_p = _round_up(Cout, LANE)
    TC = LANE
    n_tc = Cout_p // TC
    KC = K * Cin_p                      # contraction dim after kw folding

    # ---- spatial row tiling (aim for ~128 output pixels per step so the f32
    #      accumulator stays register-resident; Wo could also be grid-tiled
    #      since the width unfold makes W blocks halo-free) ----
    TH = max(1, min(Ho, _cdiv(128, Wo)))
    n_th = _cdiv(Ho, TH)
    Ho_p = n_th * TH
    TH_in = (TH - 1) * stride + K
    NT = N * n_th

    # ---- fold BatchNorm (eval) into weights + bias ----
    inv_std = 1.0 / jnp.sqrt(running_var.astype(jnp.float32) + eps)
    scale = gamma.astype(jnp.float32) * inv_std                       # (Cout,)
    bias = beta.astype(jnp.float32) - running_mean.astype(jnp.float32) * scale

    w_hwio = jnp.transpose(weight_oihw.astype(jnp.float32), (2, 3, 1, 0))
    w_hwio = w_hwio * scale[None, None, None, :]                      # scale folded
    w_p = jnp.zeros((K, K, Cin_p, Cout_p), jnp.float32)
    w_p = w_p.at[:, :, :Cin, :Cout].set(w_hwio)
    w_unf = w_p.reshape(K, KC, Cout_p).astype(jnp.bfloat16)           # (K, KC, Cp)

    bias_p = jnp.zeros((1, Cout_p), jnp.float32).at[0, :Cout].set(bias)

    # ---- input: NCHW -> NHWC, zero-pad spatial + channels, cast bf16 ----
    x_nhwc = jnp.transpose(x_nchw, (0, 2, 3, 1))
    x_padded = jnp.pad(
        x_nhwc, ((0, 0), (pad, pad), (pad, pad), (0, Cin_p - Cin))
    ).astype(jnp.bfloat16)                                            # (N,Hp,Wp,Cin_p)

    # ---- width unfold: fold kw taps + W-stride into the channel (lane) dim.
    #      x_unf[n, h, wo, kw*Cin_p + c] = x_padded[n, h, wo*stride + kw, c]
    cols = []
    for kw in range(K):
        cols.append(jax.lax.slice(
            x_padded,
            (0, 0, kw, 0),
            (N, Hp, kw + (Wo - 1) * stride + 1, Cin_p),
            (1, 1, stride, 1)))
    x_unf = jnp.concatenate(cols, axis=-1)                            # (N,Hp,Wo,KC)

    # Pad rows so every row tile (with its halo) is in bounds.
    H_need = (Ho_p - 1) * stride + K
    if H_need > Hp:
        x_unf = jnp.pad(x_unf, ((0, 0), (0, H_need - Hp), (0, 0), (0, 0)))

    # ---- extract per-tile row slabs (with halo); flatten (N, n_th) -> NT ----
    tiles = [jax.lax.slice_in_dim(x_unf, t * TH * stride,
                                  t * TH * stride + TH_in, axis=1)
             for t in range(n_th)]
    x_tiles = jnp.stack(tiles, axis=1).reshape(NT, TH_in, Wo, KC)

    kernel = functools.partial(_baseconv_kernel, K=K, stride=stride, TH=TH)

    out_flat = pl.pallas_call(
        kernel,
        out_shape=jax.ShapeDtypeStruct((NT, TH * Wo, Cout_p), x_nchw.dtype),
        grid_spec=pltpu.PrefetchScalarGridSpec(
            num_scalar_prefetch=0,
            grid=(NT, n_tc),
            in_specs=[
                # x tile: constant across the inner Cout axis -> stays resident.
                pl.BlockSpec((1, TH_in, Wo, KC), lambda r, j: (r, 0, 0, 0)),
                pl.BlockSpec((K, KC, TC), lambda r, j: (0, 0, j)),
                pl.BlockSpec((1, TC), lambda r, j: (0, j)),
            ],
            out_specs=pl.BlockSpec((1, TH * Wo, TC), lambda r, j: (r, 0, j)),
        ),
        compiler_params=pltpu.CompilerParams(
            dimension_semantics=("parallel", "parallel"),   # megacore-friendly
            vmem_limit_bytes=48 * 1024 * 1024,              # headroom on v7x 64 MiB
        ),
    )(x_tiles, w_unf, bias_p)

    # Wrapper-side layout plumbing: un-flatten, drop padding, back to NCHW.
    out = out_flat.reshape(N, n_th, TH, Wo, Cout_p).reshape(N, Ho_p, Wo, Cout_p)
    out = out[:, :Ho, :, :Cout]
    return jnp.transpose(out, (0, 3, 1, 2))


def _reference(x_nchw, weight_oihw, gamma, beta, mean, var, *, stride, eps=1e-5):
    """Pure-JAX f32 reference (lax conv, NCHW) for correctness check."""
    K = weight_oihw.shape[-1]
    pad = (K - 1) // 2
    y = jax.lax.conv_general_dilated(
        x_nchw, weight_oihw,
        window_strides=(stride, stride),
        padding=((pad, pad), (pad, pad)),
        dimension_numbers=("NCHW", "OIHW", "NCHW"),
    )
    s = (gamma / jnp.sqrt(var + eps)).reshape(1, -1, 1, 1)
    b = (beta - mean * gamma / jnp.sqrt(var + eps)).reshape(1, -1, 1, 1)
    y = y * s + b
    return y * jax.nn.sigmoid(y)


def _run_case(key, N, Cin, H, W, Cout, K, stride):
    kx, kw, kg, kb, km, kv = jax.random.split(key, 6)
    x = jax.random.normal(kx, (N, Cin, H, W), dtype=jnp.float32)
    weight = jax.random.normal(kw, (Cout, Cin, K, K), dtype=jnp.float32) * 0.1
    gamma = 1.0 + 0.1 * jax.random.normal(kg, (Cout,), dtype=jnp.float32)
    beta = 0.1 * jax.random.normal(kb, (Cout,), dtype=jnp.float32)
    mean = 0.1 * jax.random.normal(km, (Cout,), dtype=jnp.float32)
    var = jnp.abs(1.0 + 0.1 * jax.random.normal(kv, (Cout,), dtype=jnp.float32))

    out = base_conv(x, weight, gamma, beta, mean, var, stride=stride)
    out = jax.block_until_ready(out)

    ref = _reference(x, weight, gamma, beta, mean, var, stride=stride)
    assert out.shape == ref.shape, (out.shape, ref.shape)
    # bf16 inputs / f32 accumulation -> loose tolerance vs the f32 reference.
    assert jnp.allclose(out, ref, atol=3e-2, rtol=3e-2), "mismatch vs reference"


if __name__ == "__main__":
    key = jax.random.PRNGKey(0)
    k1, k2 = jax.random.split(key, 2)

    # Small shapes consistent with BaseConv(4, 8, ksize=3, stride=1):
    # exercises row tiling with halo (n_th=2) and Cout lane padding.
    _run_case(k1, N=2, Cin=4, H=16, W=16, Cout=8, K=3, stride=1)

    # Pointwise BaseConv(8, 16, ksize=1, stride=1): exercises the K=1 path.
    _run_case(k2, N=2, Cin=8, H=16, W=16, Cout=16, K=1, stride=1)

    print("KERNEL_OK")
</pallas_src>

<mosaic_0001>
module attributes {stable_mosaic.version = 11 : i64} {
  func.func @_baseconv_kernel(%arg0: i32, %arg1: i32, %arg2: memref<1x10x16x24xbf16, #tpu.memory_space<vmem>>, %arg3: memref<3x24x128xbf16, #tpu.memory_space<vmem>>, %arg4: memref<1x128xf32, #tpu.memory_space<vmem>>, %arg5: memref<1x128x128xf32, #tpu.memory_space<vmem>>) attributes {dimension_semantics = [#tpu.dimension_semantics<parallel>, #tpu.dimension_semantics<parallel>], iteration_bounds = array<i64: 4, 1>, scalar_prefetch = 0 : i64, scratch_operands = 0 : i64, tpu.core_type = #tpu.core_type<tc>, window_params = [{transform_indices = @transform_0, window_bounds = array<i64: 1, 10, 16, 24>}, {transform_indices = @transform_1, window_bounds = array<i64: 3, 24, 128>}, {transform_indices = @transform_2, window_bounds = array<i64: 1, 128>}, {transform_indices = @transform_3, window_bounds = array<i64: 1, 128, 128>}]} {
    %cst = arith.constant 0.000000e+00 : f32
    %0 = vector.broadcast %cst : f32 to vector<128x128xf32>
    %c0 = arith.constant 0 : index
    %c0_0 = arith.constant 0 : index
    %c0_1 = arith.constant 0 : index
    %c0_2 = arith.constant 0 : index
    %1 = vector.load %arg2[%c0, %c0_0, %c0_1, %c0_2] : memref<1x10x16x24xbf16, #tpu.memory_space<vmem>>, vector<1x8x16x24xbf16>
    %2 = vector.shape_cast %1 : vector<1x8x16x24xbf16> to vector<8x16x24xbf16>
    %3 = vector.shape_cast %2 : vector<8x16x24xbf16> to vector<128x24xbf16>
    %c0_3 = arith.constant 0 : index
    %c0_4 = arith.constant 0 : index
    %c0_5 = arith.constant 0 : index
    %4 = vector.load %arg3[%c0_3, %c0_4, %c0_5] : memref<3x24x128xbf16, #tpu.memory_space<vmem>>, vector<1x24x128xbf16>
    %5 = vector.shape_cast %4 : vector<1x24x128xbf16> to vector<24x128xbf16>
    %cst_6 = arith.constant dense<0.000000e+00> : vector<128x128xf32>
    %6 = tpu.matmul %3, %5, %cst_6 {dimension_numbers = #tpu.dot_dimension_numbers<[1], [0], [0], [1], [0, 0, 1, 1], [], []>} : vector<128x24xbf16>, vector<24x128xbf16>, vector<128x128xf32> -> vector<128x128xf32>
    %7 = arith.addf %0, %6 : vector<128x128xf32>
    %c0_7 = arith.constant 0 : index
    %c1 = arith.constant 1 : index
    %c0_8 = arith.constant 0 : index
    %c0_9 = arith.constant 0 : index
    %8 = vector.load %arg2[%c0_7, %c1, %c0_8, %c0_9] : memref<1x10x16x24xbf16, #tpu.memory_space<vmem>>, vector<1x8x16x24xbf16>
    %9 = vector.shape_cast %8 : vector<1x8x16x24xbf16> to vector<8x16x24xbf16>
    %10 = vector.shape_cast %9 : vector<8x16x24xbf16> to vector<128x24xbf16>
    %c1_10 = arith.constant 1 : index
    %c0_11 = arith.constant 0 : index
    %c0_12 = arith.constant 0 : index
    %11 = vector.load %arg3[%c1_10, %c0_11, %c0_12] : memref<3x24x128xbf16, #tpu.memory_space<vmem>>, vector<1x24x128xbf16>
    %12 = vector.shape_cast %11 : vector<1x24x128xbf16> to vector<24x128xbf16>
    %cst_13 = arith.constant dense<0.000000e+00> : vector<128x128xf32>
    %13 = tpu.matmul %10, %12, %cst_13 {dimension_numbers = #tpu.dot_dimension_numbers<[1], [0], [0], [1], [0, 0, 1, 1], [], []>} : vector<128x24xbf16>, vector<24x128xbf16>, vector<128x128xf32> -> vector<128x128xf32>
    %14 = arith.addf %7, %13 : vector<128x128xf32>
    %c0_14 = arith.constant 0 : index
    %c2 = arith.constant 2 : index
    %c0_15 = arith.constant 0 : index
    %c0_16 = arith.constant 0 : index
    %15 = vector.load %arg2[%c0_14, %c2, %c0_15, %c0_16] : memref<1x10x16x24xbf16, #tpu.memory_space<vmem>>, vector<1x8x16x24xbf16>
    %16 = vector.shape_cast %15 : vector<1x8x16x24xbf16> to vector<8x16x24xbf16>
    %17 = vector.shape_cast %16 : vector<8x16x24xbf16> to vector<128x24xbf16>
    %c2_17 = arith.constant 2 : index
    %c0_18 = arith.constant 0 : index
    %c0_19 = arith.constant 0 : index
    %18 = vector.load %arg3[%c2_17, %c0_18, %c0_19] : memref<3x24x128xbf16, #tpu.memory_space<vmem>>, vector<1x24x128xbf16>
    %19 = vector.shape_cast %18 : vector<1x24x128xbf16> to vector<24x128xbf16>
    %cst_20 = arith.constant dense<0.000000e+00> : vector<128x128xf32>
    %20 = tpu.matmul %17, %19, %cst_20 {dimension_numbers = #tpu.dot_dimension_numbers<[1], [0], [0], [1], [0, 0, 1, 1], [], []>} : vector<128x24xbf16>, vector<24x128xbf16>, vector<128x128xf32> -> vector<128x128xf32>
    %21 = arith.addf %14, %20 : vector<128x128xf32>
    %c0_21 = arith.constant 0 : index
    %c0_22 = arith.constant 0 : index
    %22 = vector.load %arg4[%c0_21, %c0_22] : memref<1x128xf32, #tpu.memory_space<vmem>>, vector<1x128xf32>
    %23 = vector.shape_cast %22 : vector<1x128xf32> to vector<128xf32>
    %24 = vector.shape_cast %23 : vector<128xf32> to vector<1x128xf32>
    %25 = vector.broadcast %24 : vector<1x128xf32> to vector<128x128xf32>
    %26 = arith.addf %21, %25 : vector<128x128xf32>
    %27 = arith.negf %26 : vector<128x128xf32>
    %28 = math.exp %27 : vector<128x128xf32>
    %cst_23 = arith.constant 1.000000e+00 : f32
    %29 = vector.broadcast %cst_23 : f32 to vector<128x128xf32>
    %30 = arith.addf %29, %28 : vector<128x128xf32>
    %31 = arith.divf %29, %30 : vector<128x128xf32>
    %32 = arith.mulf %26, %31 : vector<128x128xf32>
    %c0_24 = arith.constant 0 : index
    %c0_25 = arith.constant 0 : index
    %c0_26 = arith.constant 0 : index
    %33 = vector.load %arg5[%c0_24, %c0_25, %c0_26] : memref<1x128x128xf32, #tpu.memory_space<vmem>>, vector<1x128x128xf32>
    %34 = vector.shape_cast %33 : vector<1x128x128xf32> to vector<128x128xf32>
    %35 = vector.shape_cast %32 : vector<128x128xf32> to vector<1x128x128xf32>
    tpu.vector_store %arg5[%c0_24, %c0_25, %c0_26], %35 {strides = array<i32>} : memref<1x128x128xf32, #tpu.memory_space<vmem>>, vector<1x128x128xf32>,
    return
  }
  func.func @transform_0(%arg0: i32, %arg1: i32) -> (i32, i32, i32, i32) {
    %c0_i32 = arith.constant 0 : i32
    %c0_i32_0 = arith.constant 0 : i32
    %c0_i32_1 = arith.constant 0 : i32
    %c0_i32_2 = arith.constant 0 : i32
    return %arg0, %c0_i32, %c0_i32_0, %c0_i32_1 : i32, i32, i32, i32
  }
  func.func @transform_1(%arg0: i32, %arg1: i32) -> (i32, i32, i32) {
    %c0_i32 = arith.constant 0 : i32
    %c0_i32_0 = arith.constant 0 : i32
    %c0_i32_1 = arith.constant 0 : i32
    return %c0_i32, %c0_i32_0, %arg1 : i32, i32, i32
  }
  func.func @transform_2(%arg0: i32, %arg1: i32) -> (i32, i32) {
    %c0_i32 = arith.constant 0 : i32
    %c0_i32_0 = arith.constant 0 : i32
    return %c0_i32, %arg1 : i32, i32
  }
  func.func @transform_3(%arg0: i32, %arg1: i32) -> (i32, i32, i32) {
    %c0_i32 = arith.constant 0 : i32
    %c0_i32_0 = arith.constant 0 : i32
    return %arg0, %c0_i32, %arg1 : i32, i32, i32
  }
}

</mosaic_0001>

<bundles_post_ra>
// kernel: tpu_custom_call.1
= control target key start
LH: loop header
LB: loop body
LE: loop exit
PB: predicated region body
PF: predicated region fallthrough
CT: control target
= control target key end

     0   :  { %8 = vsyncpa [#allocation3], 0  ;;  %s2131_s0 = inlined_call_operand.hbm [shape: bf16[4,10,16,24], index: 0, kind: input, shape index: {}]   ;;  %s2132_s1 = inlined_call_operand.hbm [shape: bf16[3,24,128], index: 1, kind: input, shape index: {}]   ;;  %s2133_s2 = inlined_call_operand.vmem [shape: f32[1,128], index: 2, kind: input, shape index: {}]   ;;  %s2134_s3 = inlined_call_operand.hbm [shape: f32[4,128,128], index: 3, kind: output, shape index: {}]  }
   0x1   :  { %10 = vsyncpa [#allocation3 + $0x1], 0 }
   0x2   :  { %11 = vsyncpa [#allocation6], 0 }
   0x3   :  { %12 = vsyncpa [#allocation4], 0 }
   0x4   :  { %14 = vsyncpa [#allocation4 + $0x1], 0  ;;  %s1725_s12 = smov 0   ;;  %s1727_s13 = smov 0  }
   0x5   :  { %s1729_s14 = smov 0   ;;  %s1731_s15 = smov 0  }
   0x6   :  { %s1733_s16 = smov 0   ;;  %s1735_s17 = smov 0  }
   0x7 LB: > { %s1178_s18 = sadd.s32 4294967295, %s1698_s17   ;;  %s1179_s19 = sadd.s32 4294967294, %s1698_s17   ;;  %s1698_s17 = sphi %s1735_s17, %s20_s17   ;;  %s1694_s16 = sphi %s1733_s16, %s2151_s16   ;;  %s1690_s15 = sphi %s1731_s15, %s2150_s15   ;;  %s1686_s14 = sphi %s1729_s14, %s2149_s14   ;;  %s1682_s13 = sphi %s1727_s13, %s2148_s13   ;;  %s1678_s12 = sphi %s1725_s12, %s2147_s12  }
   0x8   : > { %p52_p0 = scmp.ne.s32.totalorder %s1682_s13, %s1678_s12  ;;  %p1759_p1 = scmp.eq.s32.totalorder %s1178_s18, 0 }
   0x9   : > { %p1763_p2 = scmp.eq.s32.totalorder %s1178_s18, 3  ;;  %p136_p3 = scmp.eq.s32.totalorder %s1179_s19, 3 }
   0xa   : > { %p1769_p4 = por %p1759_p1, %p52_p0  ;;  %p1180_p5 = scmp.ge.s32.totalorder %s1698_s17, 1 }
   0xb   : > { %p1774_p6 = por %p136_p3, %p52_p0  ;;  %p143_p7 = scmp.lt.s32.totalorder %s1698_s17, 5 }
   0xc   : > { %s156_s26 = sshll.u32 %s2132_s1, 4  ;;  %s1700_s28 = smov [#allocation5]   ;;  %s157_s26 = int_to_ptr.hbm [resolvable:$true] %s156_s26 }
   0xd   : > { %p1782_p8 = pnand %p1180_p5, %p143_p7  ;;  %s158_s29 = sshll.u32 %s1700_s28, 4  ;;  %s159_s29 = int_to_ptr.vmem [resolvable:$true] %s158_s29 }
   0xe   : > { %s1701_s30 = smov 64   ;;  %s1702_s4 = smov 4  }
   0xf   : > { %p1418_p9 = pneg %p1782_p8  ;;  %s32_s5 = sadd.s32 1, %s1694_s16 }
  0x10   : > { %p34_p11 = scmp.ge.s32.totalorder %s32_s5, 4  ;;  %s39_s6 = sadd.s32 1, %s1686_s14 }
  0x11   : > { %p1419_p10 = pnand %p1418_p9, %p1759_p1  ;;  %p46_p12 = scmp.ne.s32.totalorder %s1686_s14, %s1682_s13 }
  0x12   : > { %p47_p13 = scmp.eq.s32.totalorder %s1698_s17, 0  ;;  %s2153_s5 = smov (%p34_p11, %s32_s5), 0 }
  0x13   : > { %1421 = dma.hbm_to_vmem [thread:$0]  (!%p1419_p10), %s157_s26, 576, %s159_s29, [#allocation6], %s1701_s30, %s1701_s30, %s1702_s4  }
  0x14   : > { %p48_p0 = por %p47_p13, %p46_p12  ;;  %p1802_p3 = por %p1763_p2, %p46_p12 }
  0x15   : > { %s36_s8 = ssub.s32 %s1694_s16, %s2153_s5  ;;  %p1431_p5 = scmp.lt.s32.totalorder %s1698_s17, 4 }
  0x16   : > { %p37_p7 = scmp.eq.s32.totalorder %s36_s8, 0  ;;  %s178_s9 = sand.u32 1, %s1686_s14  }
  0x17   : > { %s1407_s10 = smul.u32 80, %s178_s9  ;;  %p1423_p9 = pnand %p1431_p5, %p48_p0 }
  0x18   : > { %s1811_s11 = scalar_select %p37_p7, %s1686_s14, %s39_s6  }
  0x19   : > { %s1408_s18 = smul.u32 80, %s1694_s16  ;;  %s182_s19 = scalar_lea.vmem [#allocation2], %s1407_s10 }
  0x1a   : > { %s190_s24 = sshll.u32 %s182_s19, 4  ;;  %s179_s29 = scalar_lea.sflag [#allocation3], %s178_s9  ;;  %s191_s24 = int_to_ptr.vmem [resolvable:$true] %s190_s24 }
  0x1b   : > { %s187_s28 = scalar_lea.hbm %s2131_s0, %s1408_s18  ;;  %202 = sbr.rel (%p1782_p8) target bundleno = 312 (0x138), region = 32 }
  0x1c   : > { %s188_s21 = sshll.u32 %s187_s28, 4  ;;  %s1823_s6 = sand.u32 (!%p1782_p8), 1, %s1682_s13   ;;  %s189_s21 = int_to_ptr.hbm [resolvable:$true] %s188_s21 }
  0x1d   : > { %1425 = dma.hbm_to_vmem [thread:$0]  (!%p1423_p9), %s189_s21, 1280, %s191_s24, %s179_s29, %s1701_s30, %s1701_s30, %s1702_s4  }
  0x1e   : > { %s1409_s8 = smul.u32 (!%p1782_p8), 80, %s1823_s6  ;;  %s205_s10 = scalar_lea.sflag (!%p1782_p8), [#allocation3], %s1823_s6 }
  0x20   : > { %s1827_s18 = scalar_lea.vmem [#allocation2], %s1409_s8 }
  0x21   : > { %1665 = dma.done.wait (%p1769_p4), %s205_s10, 1280  }
  0x22   : > { %1667 = vsyncadd (%p1769_p4), %s205_s10, 4294966016 }
  0x23   : > { %1669 = dma.done.wait (%p1759_p1), [#allocation6], 576  }
  0x24   : > { %1671 = vsyncadd (%p1759_p1), [#allocation6], 4294966720  ;;  %v283_v0 = vld [vmem:[#allocation5 + $0x14] sm:$0xf]  ;;  %v262_v1 = vld [vmem:[#allocation5 + $0x8] sm:$0xf] }
  0x25   : > { %v556_v2 = vld [vmem:[#allocation5 + $0x20] sm:$0xf]  ;;  %v329_v3 = vunpack.c.l.b16 %v283_v0  ;;  %v456_v4 = vunpack.c.l.b16 %v262_v1  ;;  %vm358_vm0 = vcmask 1043456   ;;  %v1390_v12 = vld [vmem:[#allocation5 + $0xc] sm:$0xff]  ;;  %v1399_v14 = vld [vmem:[#allocation5 + $0x18] sm:$0xff]  ;;  %vm333_vm1 = vcmask 195584  }
  0x26   : > { %v602_v5 = vunpack.c.l.b16 %v556_v2  ;;  %v1381_v13 = vld [vmem:[#allocation5] sm:$0xff]  ;;  %v1382_v15 = vld [vmem:[%s1827_s18 + $0x8] sm:$0xff]  ;;  %v1388_v16 = vld [vmem:[%s1827_s18 + $0x38] sm:$0xff]  ;;  %s1187_s27 = sshll.u32 %s1823_s6, 7  ;;  %s1400_s4 = sshll.u32 %s1690_s15, 7 }
  0x27   : > { %v331_v6 = vpack.c.b16 %v329_v3, %v329_v3  ;;  %v458_v7 = vpack.c.b16 %v456_v4, %v456_v4  ;;  %v1373_v17 = vld [vmem:[%s1827_s18] sm:$0xff]  ;;  %v1391_v18 = vld [vmem:[%s1827_s18 + $0x10] sm:$0xff]  ;;  %v1374_v21 = vld [vmem:[%s1827_s18 + $0x8] sm:$0xff]  ;;  %s1914_s30 = scalar_lea.vmem [#allocation7], %s1187_s27  ;;  %s1067_s19 = scalar_lea.hbm %s2134_s3, %s1400_s4 }
  0x28   : > { %v604_v8 = vpack.c.b16 %v602_v5, %v602_v5  ;;  %v1383_v19 = vld [vmem:[%s1827_s18 + $0x10] sm:$0xff]  ;;  %v1389_v20 = vld [vmem:[%s1827_s18 + $0x40] sm:$0xff]  ;;  %v1392_v22 = vld [vmem:[%s1827_s18 + $0x18] sm:$0xff]  ;;  %s1068_s24 = sshll.u32 %s1914_s30, 4  ;;  %s1070_s25 = sshll.u32 %s1067_s19, 4  ;;  %s1069_s24 = int_to_ptr.vmem [resolvable:$true] %s1068_s24  ;;  %s1071_s25 = int_to_ptr.hbm [resolvable:$true] %s1070_s25 }
  0x29   : > { %v360_v9 = vsel %vm358_vm0, %v331_v6, 0  ;;  %v485_v10 = vsel %vm358_vm0, %v458_v7, 0  ;;  %v1384_v23 = vld [vmem:[%s1827_s18 + $0x18] sm:$0xff]  ;;  %v1379_v24 = vld [vmem:[%s1827_s18 + $0x30] sm:$0xff]  ;;  %v1393_v26 = vld [vmem:[%s1827_s18 + $0x20] sm:$0xff]  ;;  %s1055_s26 = scalar_lea.sflag [#allocation4], %s1823_s6 }
  0x2a   : > { %v631_v11 = vsel %vm358_vm0, %v604_v8, 0  ;;  %368 = vmatpush.bf16.msra.mxu0 %v360_v9  ;;  %1401 = vmatpush.bf16.msra.mxu3 %v360_v9  ;;  %v1375_v25 = vld [vmem:[%s1827_s18 + $0x10] sm:$0xff]  ;;  %v1385_v27 = vld [vmem:[%s1827_s18 + $0x20] sm:$0xff]  ;;  %v1380_v28 = vld [vmem:[%s1827_s18 + $0x38] sm:$0xff]  ;;  %s1626_s28 = sshra.s32 %s1071_s25, 4  ;;  %s1632_s10 = scalar_lea.hbm %s2134_s3, 512  ;;  %s1627_s28 = int_to_ptr.hbm [resolvable:$true] %s1626_s28 }
  0x2b   : > { %493 = vmatpush.bf16.msra.mxu1 %v485_v10  ;;  %639 = vmatpush.bf16.msra.mxu2 %v631_v11  ;;  %v1376_v29 = vld [vmem:[%s1827_s18 + $0x18] sm:$0xff]  ;;  %v1394_v30 = vld [vmem:[%s1827_s18 + $0x28] sm:$0xff]  ;;  %v1397_v32 = vld [vmem:[%s1827_s18 + $0x40] sm:$0xff]  ;;  %s1628_s21 = scalar_lea.hbm %s1627_s28, 128  ;;  %p1633_p8 = scmp.lt.s32.totalorder %s1627_s28, %s2134_s3 }
  0x2c   : > { %v1386_v31 = vld [vmem:[%s1827_s18 + $0x28] sm:$0xff]  ;;  %v1377_v33 = vld [vmem:[%s1827_s18 + $0x20] sm:$0xff]  ;;  %v1395_v34 = vld [vmem:[%s1827_s18 + $0x30] sm:$0xff]  ;;  %p1629_p1 = scmp.ne.s32.totalorder %s1627_s28, %s1628_s21  ;;  %p1634_p10 = scmp.lt.s32.totalorder %s1632_s10, %s1628_s21 }
  0x2d   : > { %v1387_v35 = vld [vmem:[%s1827_s18 + $0x30] sm:$0xff]  ;;  %v1398_v36 = vld [vmem:[%s1827_s18 + $0x48] sm:$0xff]  ;;  %v1396_v38 = vld [vmem:[%s1827_s18 + $0x38] sm:$0xff] }
  0x2e   : > { %369 = vmatpush.bf16.msra.mxu0 %v1390_v12  ;;  %1402 = vmatpush.bf16.msra.mxu3 %v1390_v12  ;;  %v1378_v37 = vld [vmem:[%s1827_s18 + $0x28] sm:$0xff]  ;;  %v1890_v43 = vld [vmem:[%s2133_s2] ss:$0 sm:$0xff]  ;;  %p1630_p2 = pnand %p1629_p1, %p1802_p3  ;;  %p1635_p11 = por %p1634_p10, %p1633_p8 }
  0x2f   : > { %494 = vmatpush.bf16.msra.mxu1 %v1381_v13  ;;  %640 = vmatpush.bf16.msra.mxu2 %v1399_v14 }
  0x30   : > { %p1631_p4 = pneg %p1630_p2 }
  0x31   : > { %1240 = vmatmul.msk.bf16.vlgmr.msra.gmra.mxu0 %vm333_vm1, %v1382_v15  ;;  %1246 = vmatmul.msk.bf16.vlgmr.msra.gmra.mxu3 %vm333_vm1, %v1388_v16 }
  0x32   : > { %1403 = vmatpush.bf16.msrb.mxu3 %v485_v10  ;;  %1284 = vmatmul.msk.bf16.vlgmr.msra.gmra.mxu1 %vm333_vm1, %v1373_v17  ;;  %p1636_p12 = pnand %p1635_p11, %p1631_p4 }
  0x33   : > { %1344 = vmatmul.msk.bf16.vlgmr.msra.gmra.mxu2 %vm333_vm1, %v1391_v18 }
  0x36   : > { %1404 = vmatpush.bf16.msrb.mxu3 %v1381_v13 }
  0x3a   : > { %1405 = vmatpush.bf16.msra.mxu3 %v631_v11 }
  0x3e   : > { %1406 = vmatpush.bf16.msra.mxu3 %v1399_v14 }
  0x41   : > { %1241 = vmatmul.msk.bf16.gmra.mxu0 %vm333_vm1, %v1383_v19  ;;  %1247 = vmatmul.msk.bf16.gmra.mxu3 %vm333_vm1, %v1389_v20 }
  0x42   : > { %1285 = vmatmul.msk.bf16.gmra.mxu1 %vm333_vm1, %v1374_v21 }
  0x43   : > { %1345 = vmatmul.msk.bf16.gmra.mxu2 %vm333_vm1, %v1392_v22 }
  0x51   : > { %1242 = vmatmul.msk.bf16.gmra.mxu0 %vm333_vm1, %v1384_v23  ;;  %1290 = vmatmul.msk.bf16.vlgmr.msrb.gmra.mxu3 %vm333_vm1, %v1379_v24 }
  0x52   : > { %1286 = vmatmul.msk.bf16.gmra.mxu1 %vm333_vm1, %v1375_v25 }
  0x53   : > { %1346 = vmatmul.msk.bf16.gmra.mxu2 %vm333_vm1, %v1393_v26 }
  0x61   : > { %1243 = vmatmul.msk.bf16.gmra.mxu0 %vm333_vm1, %v1385_v27  ;;  %1291 = vmatmul.msk.bf16.gmra.mxu3 %vm333_vm1, %v1380_v28 }
  0x62   : > { %1287 = vmatmul.msk.bf16.gmra.mxu1 %vm333_vm1, %v1376_v29 }
  0x63   : > { %1347 = vmatmul.msk.bf16.gmra.mxu2 %vm333_vm1, %v1394_v30 }
  0x71   : > { %1244 = vmatmul.msk.bf16.gmra.mxu0 %vm333_vm1, %v1386_v31  ;;  %1350 = vmatmul.msk.bf16.vlgmr.msra.gmra.mxu3 %vm333_vm1, %v1397_v32 }
  0x72   : > { %1288 = vmatmul.msk.bf16.gmra.mxu1 %vm333_vm1, %v1377_v33 }
  0x73   : > { %1348 = vmatmul.msk.bf16.gmra.mxu2 %vm333_vm1, %v1395_v34 }
  0x81   : > { %1245 = vmatmul.msk.bf16.gmra.mxu0 %vm333_vm1, %v1387_v35  ;;  %1351 = vmatmul.msk.bf16.gmra.mxu3 %vm333_vm1, %v1398_v36 }
  0x82   : > { %1289 = vmatmul.msk.bf16.gmra.mxu1 %vm333_vm1, %v1378_v37 }
  0x83   : > { %1349 = vmatmul.msk.bf16.gmra.mxu2 %vm333_vm1, %v1396_v38 }
  0xae   : > { %v371_v39 = vpop.f32.mrf.mxu0 }
  0xaf   : > { %v496_v40 = vpop.f32.mrf.mxu1 }
  0xb0   : > { %v497_v41 = vadd.f32 %v496_v40, %v371_v39 }
  0xb4   : > { %v1885_v42 = vpop.f32.mrf.mxu3 }
  0xb6   : > { %v642_v44 = vpop.f32.mrf.mxu2  ;;  %v373_v46 = vpop.f32.mrf.mxu0 }
  0xb7   : > { %v682_v45 = vadd.f32 %v642_v44, %v497_v41  ;;  %v498_v47 = vpop.f32.mrf.mxu1 }
  0xb8   : > { %v499_v50 = vadd.f32 %v498_v47, %v373_v46 }
  0xb9   : > { %v702_v48 = vadd.f32 %v1890_v43, %v682_v45 }
  0xbb   : > { %v1352_v49 = vmul.f32 -1.442695, %v702_v48 }
  0xbc   : > { %v1893_v51 = vpop.f32.mrf.mxu3 }
  0xbd   : > { %1488 = vpow2.f32 %v1352_v49 }
  0xbe   : > { %v644_v52 = vpop.f32.mrf.mxu2  ;;  %v376_v54 = vpop.f32.mrf.mxu0 }
  0xbf   : > { %v683_v53 = vadd.f32 %v644_v52, %v499_v50  ;;  %v501_v55 = vpop.f32.mrf.mxu1 }
  0xc0   : > { %v502_v59 = vadd.f32 %v501_v55, %v376_v54 }
  0xc1   : > { %v1896_v56 = vadd.f32 %v1890_v43, %v683_v53 }
  0xc3   : > { %v1489_v57 = vpop.eup %1488  ;;  %v1353_v58 = vmul.f32 -1.442695, %v1896_v56 }
  0xc4   : > { %v766_v60 = vadd.f32 1.0, %v1489_v57  ;;  %v1899_v61 = vpop.f32.mrf.mxu3 }
  0xc5   : > { %1490 = vpow2.f32 %v1353_v58 }
  0xc6   : > { %1492 = vrcp.f32 %v766_v60  ;;  %v647_v62 = vpop.f32.mrf.mxu2  ;;  %v378_v0 = vpop.f32.mrf.mxu0  ;;  %v793_v14 = vand.u32 2147483648, %v766_v60  ;;  %v791_v17 = vand.u32 2147483647, %v766_v60  ;;  %vm787_vm3 = vweird.f32 %v766_v60 }
  0xc7   : > { %v684_v63 = vadd.f32 %v647_v62, %v502_v59  ;;  %v503_v1 = vpop.f32.mrf.mxu1 }
  0xc8   : > { %v504_v8 = vadd.f32 %v503_v1, %v378_v0  ;;  %v794_v23 = vor.u32 1.1754944e-38, %v793_v14  ;;  %vm792_vm5 = vcmp.eq.f32.partialorder %v791_v17, 8.507059e+37 }
  0xc9   : > { %v1902_v2 = vadd.f32 %v1890_v43, %v684_v63 }
  0xcb   : > { %v1491_v3 = vpop.eup %1490  ;;  %v1354_v4 = vmul.f32 -1.442695, %v1902_v2 }
  0xcc   : > { %v1493_v5 = vpop.eup %1492  ;;  %v767_v6 = vadd.f32 1.0, %v1491_v3  ;;  %v1905_v9 = vpop.f32.mrf.mxu3 }
  0xcd   : > { %v783_v7 = vmul.f32 %v1493_v5, %v766_v60  ;;  %1494 = vpow2.f32 %v1354_v4  ;;  %vm788_vm2 = vweird.f32 %v1493_v5 }
  0xce   : > { %1496 = vrcp.f32 %v767_v6  ;;  %v649_v10 = vpop.f32.mrf.mxu2  ;;  %v381_v13 = vpop.f32.mrf.mxu0  ;;  %vm789_vm4 = vmor %vm787_vm3, %vm788_vm2  ;;  %v808_v34 = vand.u32 2147483648, %v767_v6  ;;  %v806_v38 = vand.u32 2147483647, %v767_v6  ;;  %vm802_vm7 = vweird.f32 %v767_v6 }
  0xcf   : > { %v784_v11 = vsub.f32 1.0, %v783_v7  ;;  %v685_v12 = vadd.f32 %v649_v10, %v504_v8  ;;  %v506_v15 = vpop.f32.mrf.mxu1 }
  0xd0   : > { %v507_v25 = vadd.f32 %v506_v15, %v381_v13  ;;  %v809_v45 = vor.u32 1.1754944e-38, %v808_v34  ;;  %vm807_vm9 = vcmp.eq.f32.partialorder %v806_v38, 8.507059e+37 }
  0xd1   : > { %v785_v16 = vmul.f32 %v1493_v5, %v784_v11  ;;  %v1908_v18 = vadd.f32 %v1890_v43, %v685_v12 }
  0xd3   : > { %v1495_v19 = vpop.eup %1494  ;;  %v786_v20 = vadd.f32 %v1493_v5, %v785_v16  ;;  %v1355_v21 = vmul.f32 -1.442695, %v1908_v18 }
  0xd4   : > { %v1497_v22 = vpop.eup %1496  ;;  %v768_v24 = vadd.f32 1.0, %v1495_v19  ;;  %v1912_v28 = vpop.f32.mrf.mxu3 }
  0xd5   : > { %v790_v26 = vsel %vm789_vm4, %v1493_v5, %v786_v20  ;;  %v798_v27 = vmul.f32 %v1497_v22, %v767_v6  ;;  %1498 = vpow2.f32 %v1355_v21  ;;  %vm803_vm6 = vweird.f32 %v1497_v22 }
  0xd6   : > { %v795_v29 = vsel %vm792_vm5, %v794_v23, %v790_v26  ;;  %1500 = vrcp.f32 %v768_v24  ;;  %v652_v30 = vpop.f32.mrf.mxu2  ;;  %v383_v33 = vpop.f32.mrf.mxu0  ;;  %vm804_vm8 = vmor %vm802_vm7, %vm803_vm6  ;;  %v823_v59 = vand.u32 2147483648, %v768_v24  ;;  %v821_v0 = vand.u32 2147483647, %v768_v24 }
  0xd7   : > { %v1022_v31 = vmul.f32 %v795_v29, %v702_v48  ;;  %v799_v32 = vsub.f32 1.0, %v798_v27  ;;  %v686_v35 = vadd.f32 %v652_v30, %v507_v25  ;;  %v508_v36 = vpop.f32.mrf.mxu1  ;;  %vm817_vm11 = vweird.f32 %v768_v24 }
  0xd8   : > { %v509_v53 = vadd.f32 %v508_v36, %v383_v33  ;;  %v824_v6 = vor.u32 1.1754944e-38, %v823_v59  ;;  %vm822_vm13 = vcmp.eq.f32.partialorder %v821_v0, 8.507059e+37 }
  0xd9   : > { %1038 = vst [vmem:[%s1914_s30] sm:$0xff] %v1022_v31  ;;  %v800_v37 = vmul.f32 %v1497_v22, %v799_v32  ;;  %v1918_v39 = vadd.f32 %v1890_v43, %v686_v35 }
  0xdb   : > { %v1499_v40 = vpop.eup %1498  ;;  %v801_v41 = vadd.f32 %v1497_v22, %v800_v37  ;;  %v1356_v47 = vmul.f32 -1.442695, %v1918_v39 }
  0xdc   : > { %v1501_v44 = vpop.eup %1500  ;;  %v769_v46 = vadd.f32 1.0, %v1499_v40  ;;  %v1921_v50 = vpop.f32.mrf.mxu3 }
  0xdd   : > { %v805_v48 = vsel %vm804_vm8, %v1497_v22, %v801_v41  ;;  %v813_v49 = vmul.f32 %v1501_v44, %v768_v24  ;;  %vm818_vm10 = vweird.f32 %v1501_v44 }
  0xde   : > { %v810_v52 = vsel %vm807_vm9, %v809_v45, %v805_v48  ;;  %1502 = vrcp.f32 %v769_v46  ;;  %v654_v54 = vpop.f32.mrf.mxu2  ;;  %v386_v58 = vpop.f32.mrf.mxu0  ;;  %vm819_vm12 = vmor %vm817_vm11, %vm818_vm10  ;;  %v838_v20 = vand.u32 2147483648, %v769_v46  ;;  %v836_v23 = vand.u32 2147483647, %v769_v46 }
  0xdf   : > { %v1023_v55 = vmul.f32 %v810_v52, %v1896_v56  ;;  %v814_v57 = vsub.f32 1.0, %v813_v49  ;;  %1504 = vpow2.f32 %v1356_v47  ;;  %v687_v60 = vadd.f32 %v654_v54, %v509_v53  ;;  %v511_v62 = vpop.f32.mrf.mxu1 }
  0xe0   : > { %v512_v4 = vadd.f32 %v511_v62, %v386_v58  ;;  %vm832_vm15 = vweird.f32 %v769_v46  ;;  %vm837_vm1 = vcmp.eq.f32.partialorder %v836_v23, 8.507059e+37  ;;  %v527_v58 = vadd.f32 %v1912_v28, %v1885_v42 }
  0xe1   : > { %1039 = vst [vmem:[%s1914_s30 + $0x8] sm:$0xff] %v1023_v55  ;;  %v815_v63 = vmul.f32 %v1501_v44, %v814_v57  ;;  %v1926_v1 = vadd.f32 %v1890_v43, %v687_v60 }
  0xe3   : > { %v816_v3 = vadd.f32 %v1501_v44, %v815_v63  ;;  %v1357_v56 = vmul.f32 -1.442695, %v1926_v1 }
  0xe4   : > { %v1503_v5 = vpop.eup %1502  ;;  %v1929_v11 = vpop.f32.mrf.mxu3 }
  0xe5   : > { %v1505_v7 = vpop.eup %1504  ;;  %v820_v8 = vsel %vm819_vm12, %v1501_v44, %v816_v3  ;;  %v828_v10 = vmul.f32 %v1503_v5, %v769_v46  ;;  %1506 = vpow2.f32 %v1357_v56  ;;  %vm833_vm14 = vweird.f32 %v1503_v5 }
  0xe6   : > { %v825_v12 = vsel %vm822_vm13, %v824_v6, %v820_v8  ;;  %v770_v13 = vadd.f32 1.0, %v1505_v7  ;;  %v657_v14 = vpop.f32.mrf.mxu2  ;;  %v388_v19 = vpop.f32.mrf.mxu0  ;;  %vm834_vm0 = vmor %vm832_vm15, %vm833_vm14 }
  0xe7   : > { %v1024_v15 = vmul.f32 %v825_v12, %v1902_v2  ;;  %v829_v16 = vsub.f32 1.0, %v828_v10  ;;  %v688_v17 = vadd.f32 %v657_v14, %v512_v4  ;;  %v513_v21 = vpop.f32.mrf.mxu1  ;;  %v839_v2 = vor.u32 1.1754944e-38, %v838_v20 }
  0xe8   : > { %1508 = vrcp.f32 %v770_v13  ;;  %v514_v34 = vadd.f32 %v513_v21, %v388_v19  ;;  %v853_v45 = vand.u32 2147483648, %v770_v13  ;;  %v851_v49 = vand.u32 2147483647, %v770_v13 }
  0xe9   : > { %1040 = vst [vmem:[%s1914_s30 + $0x10] sm:$0xff] %v1024_v15  ;;  %v830_v22 = vmul.f32 %v1503_v5, %v829_v16  ;;  %v1934_v24 = vadd.f32 %v1890_v43, %v688_v17  ;;  %vm847_vm3 = vweird.f32 %v770_v13 }
  0xea   : > { %v854_v59 = vor.u32 1.1754944e-38, %v853_v45  ;;  %vm852_vm5 = vcmp.eq.f32.partialorder %v851_v49, 8.507059e+37 }
  0xeb   : > { %v831_v25 = vadd.f32 %v1503_v5, %v830_v22  ;;  %v1358_v26 = vmul.f32 -1.442695, %v1934_v24  ;;  %v1507_v27 = vpop.eup %1506 }
  0xec   : > { %v771_v30 = vadd.f32 1.0, %v1507_v27  ;;  %v1937_v31 = vpop.f32.mrf.mxu3 }
  0xed   : > { %v835_v29 = vsel %vm834_vm0, %v1503_v5, %v831_v25  ;;  %1510 = vpow2.f32 %v1358_v26 }
  0xee   : > { %v1509_v32 = vpop.eup %1508  ;;  %v840_v33 = vsel %vm837_vm1, %v839_v2, %v835_v29  ;;  %v659_v35 = vpop.f32.mrf.mxu2  ;;  %1512 = vrcp.f32 %v771_v30  ;;  %v866_v56 = vand.u32 2147483647, %v771_v30  ;;  %v868_v7 = vand.u32 2147483648, %v771_v30 }
  0xef   : > { %v1025_v36 = vmul.f32 %v840_v33, %v1908_v18  ;;  %v843_v37 = vmul.f32 %v1509_v32, %v770_v13  ;;  %v689_v38 = vadd.f32 %v659_v35, %v514_v34  ;;  %v391_v40 = vpop.f32.mrf.mxu0  ;;  %v516_v41 = vpop.f32.mrf.mxu1  ;;  %vm848_vm2 = vweird.f32 %v1509_v32 }
  0xf0   : > { %v517_v18 = vadd.f32 %v516_v41, %v391_v40  ;;  %vm849_vm4 = vmor %vm847_vm3, %vm848_vm2  ;;  %v529_v13 = vadd.f32 %v1921_v50, %v1893_v51  ;;  %vm862_vm7 = vweird.f32 %v771_v30  ;;  %vm867_vm9 = vcmp.eq.f32.partialorder %v866_v56, 8.507059e+37 }
  0xf1   : > { %1041 = vst [vmem:[%s1914_s30 + $0x18] sm:$0xff] %v1025_v36  ;;  %v844_v44 = vsub.f32 1.0, %v843_v37  ;;  %v1942_v46 = vadd.f32 %v1890_v43, %v689_v38  ;;  %v869_v19 = vor.u32 1.1754944e-38, %v868_v7  ;;  %v532_v40 = vadd.f32 %v1929_v11, %v1899_v61 }
  0xf3   : > { %v1511_v47 = vpop.eup %1510  ;;  %v845_v48 = vmul.f32 %v1509_v32, %v844_v44  ;;  %v1359_v53 = vmul.f32 -1.442695, %v1942_v46 }
  0xf4   : > { %v1944_v52 = vadd.f32 1.0, %v1511_v47  ;;  %v1513_v54 = vpop.eup %1512  ;;  %v672_v57 = vpop.f32.mrf.mxu3 }
  0xf5   : > { %v846_v55 = vadd.f32 %v1509_v32, %v845_v48  ;;  %v858_v60 = vmul.f32 %v1513_v54, %v771_v30  ;;  %v694_v5 = vadd.f32 %v672_v57, %v527_v58  ;;  %vm863_vm6 = vweird.f32 %v1513_v54 }
  0xf6   : > { %1514 = vrcp.f32 %v1944_v52  ;;  %v662_v62 = vpop.f32.mrf.mxu2  ;;  %vm864_vm8 = vmor %vm862_vm7, %vm863_vm6  ;;  %v881_v30 = vand.u32 2147483647, %v1944_v52  ;;  %vm877_vm11 = vweird.f32 %v1944_v52 }
  0xf7   : > { %v850_v63 = vsel %vm849_vm4, %v1509_v32, %v846_v55  ;;  %1516 = vpow2.f32 %v1359_v53  ;;  %v859_v3 = vsub.f32 1.0, %v858_v60  ;;  %v690_v4 = vadd.f32 %v662_v62, %v517_v18  ;;  %v393_v10 = vpop.f32.mrf.mxu0  ;;  %v518_v12 = vpop.f32.mrf.mxu1 }
  0xf8   : > { %v855_v0 = vsel %vm852_vm5, %v854_v59, %v850_v63  ;;  %v1955_v28 = vadd.f32 %v1890_v43, %v694_v5  ;;  %v519_v21 = vadd.f32 %v518_v12, %v393_v10  ;;  %v883_v32 = vand.u32 2147483648, %v1944_v52 }
  0xf9   : > { %v1026_v6 = vmul.f32 %v855_v0, %v1918_v39  ;;  %v860_v8 = vmul.f32 %v1513_v54, %v859_v3  ;;  %v1952_v42 = vadd.f32 %v1890_v43, %v690_v4  ;;  %vm882_vm13 = vcmp.eq.f32.partialorder %v881_v30, 8.507059e+37 }
  0xfa   : > { %v1364_v16 = vmul.f32 -1.442695, %v1955_v28  ;;  %v884_v41 = vor.u32 1.1754944e-38, %v883_v32  ;;  %v534_v63 = vadd.f32 %v1937_v31, %v1905_v9 }
  0xfb   : > { %1042 = vst [vmem:[%s1914_s30 + $0x20] sm:$0xff] %v1026_v6  ;;  %v861_v15 = vadd.f32 %v1513_v54, %v860_v8  ;;  %v1360_v39 = vmul.f32 -1.442695, %v1952_v42 }
  0xfc   : > { %v1515_v14 = vpop.eup %1514  ;;  %v674_v22 = vpop.f32.mrf.mxu3 }
  0xfd   : > { %v1517_v17 = vpop.eup %1516  ;;  %v873_v20 = vmul.f32 %v1515_v14, %v1944_v52  ;;  %v865_v23 = vsel %vm864_vm8, %v1513_v54, %v861_v15  ;;  %1518 = vpow2.f32 %v1360_v39  ;;  %v695_v50 = vadd.f32 %v674_v22, %v529_v13 }
  0xfe   : > { %v1963_v25 = vadd.f32 1.0, %v1517_v17  ;;  %v664_v51 = vpop.f32.mrf.mxu2  ;;  %v870_v26 = vsel %vm867_vm9, %v869_v19, %v865_v23  ;;  %1520 = vpow2.f32 %v1364_v16  ;;  %vm878_vm10 = vweird.f32 %v1515_v14 }
  0xff   : > { %v874_v27 = vsub.f32 1.0, %v873_v20  ;;  %v691_v2 = vadd.f32 %v664_v51, %v519_v21  ;;  %v1027_v29 = vmul.f32 %v870_v26, %v1926_v1  ;;  %v1973_v35 = vadd.f32 %v1890_v43, %v695_v50  ;;  %vm879_vm12 = vmor %vm877_vm11, %vm878_vm10  ;;  %v396_v44 = vpop.f32.mrf.mxu0  ;;  %v521_v45 = vpop.f32.mrf.mxu1 }
 0x100   : > { %1522 = vrcp.f32 %v1963_v25  ;;  %v896_v49 = vand.u32 2147483647, %v1963_v25  ;;  %v522_v61 = vadd.f32 %v521_v45, %v396_v44  ;;  %v898_v60 = vand.u32 2147483648, %v1963_v25 }
 0x101   : > { %v875_v33 = vmul.f32 %v1515_v14, %v874_v27  ;;  %v1970_v34 = vadd.f32 %v1890_v43, %v691_v2  ;;  %1043 = vst [vmem:[%s1914_s30 + $0x28] sm:$0xff] %v1027_v29  ;;  %v1365_v37 = vmul.f32 -1.442695, %v1973_v35  ;;  %vm892_vm14 = vweird.f32 %v1963_v25 }
 0x102   : > { %vm1995_vm15 = vcmp.eq.f32.partialorder %v896_v49, 8.507059e+37  ;;  %v899_v56 = vor.u32 1.1754944e-38, %v898_v60 }
 0x103   : > { %v876_v36 = vadd.f32 %v1515_v14, %v875_v33  ;;  %v1361_v1 = vmul.f32 -1.442695, %v1970_v34  ;;  %v1519_v38 = vpop.eup %1518 }
 0x104   : > { %v1521_v47 = vpop.eup %1520  ;;  %v1982_v53 = vadd.f32 1.0, %v1519_v38  ;;  %v677_v52 = vpop.f32.mrf.mxu3 }
 0x105   : > { %v880_v48 = vsel %vm879_vm12, %v1515_v14, %v876_v36  ;;  %1524 = vpow2.f32 %v1361_v1  ;;  %v1984_v55 = vadd.f32 1.0, %v1521_v47  ;;  %v696_v59 = vadd.f32 %v677_v52, %v532_v40 }
 0x106   : > { %v1523_v18 = vpop.eup %1522  ;;  %v885_v54 = vsel %vm882_vm13, %v884_v41, %v880_v48  ;;  %1526 = vpow2.f32 %v1365_v37  ;;  %v667_v11 = vpop.f32.mrf.mxu2  ;;  %vm907_vm1 = vweird.f32 %v1982_v53  ;;  %v911_v7 = vand.u32 2147483647, %v1982_v53 }
 0x107   : > { %v1028_v57 = vmul.f32 %v885_v54, %v1934_v24  ;;  %v888_v58 = vmul.f32 %v1523_v18, %v1963_v25  ;;  %1528 = vrcp.f32 %v1982_v53  ;;  %vm893_vm0 = vweird.f32 %v1523_v18  ;;  %v398_v16 = vpop.f32.mrf.mxu0  ;;  %v523_v17 = vpop.f32.mrf.mxu1 }
 0x108   : > { %1530 = vrcp.f32 %v1984_v55  ;;  %v692_v4 = vadd.f32 %v667_v11, %v522_v61  ;;  %v2000_v5 = vadd.f32 %v1890_v43, %v696_v59  ;;  %v913_v10 = vand.u32 2147483648, %v1982_v53  ;;  %vm894_vm3 = vmor %vm892_vm14, %vm893_vm0 }
 0x109   : > { %1044 = vst [vmem:[%s1914_s30 + $0x30] sm:$0xff] %v1028_v57  ;;  %v889_v62 = vsub.f32 1.0, %v888_v58  ;;  %vm967_vm2 = vweird.f32 %v1984_v55  ;;  %v971_v15 = vand.u32 2147483647, %v1984_v55  ;;  %v973_v39 = vand.u32 2147483648, %v1984_v55 }
 0x10a   : > { %v2018_v21 = vadd.f32 %v1890_v43, %v692_v4  ;;  %v1366_v22 = vmul.f32 -1.442695, %v2000_v5  ;;  %vm2023_vm4 = vcmp.eq.f32.partialorder %v911_v7, 8.507059e+37  ;;  %v914_v27 = vor.u32 1.1754944e-38, %v913_v10 }
 0x10b   : > { %v1525_v24 = vpop.eup %1524  ;;  %v890_v3 = vmul.f32 %v1523_v18, %v889_v62  ;;  %v524_v29 = vadd.f32 %v523_v17, %v398_v16  ;;  %vm2029_vm7 = vcmp.eq.f32.partialorder %v971_v15, 8.507059e+37 }
 0x10c   : > { %v1527_v6 = vpop.eup %1526  ;;  %v2004_v9 = vadd.f32 1.0, %v1525_v24  ;;  %v679_v30 = vpop.f32.mrf.mxu3  ;;  %v1362_v1 = vmul.f32 -1.442695, %v2018_v21 }
 0x10d   : > { %v1529_v31 = vpop.eup %1528  ;;  %v891_v8 = vadd.f32 %v1523_v18, %v890_v3  ;;  %v2008_v12 = vadd.f32 1.0, %v1527_v6  ;;  %v697_v41 = vadd.f32 %v679_v30, %v534_v63 }
 0x10e   : > { %v1531_v13 = vpop.eup %1530  ;;  %v903_v14 = vmul.f32 %v1529_v31, %v1982_v53  ;;  %1532 = vrcp.f32 %v2004_v9  ;;  %v669_v50 = vpop.f32.mrf.mxu2  ;;  %vm908_vm5 = vweird.f32 %v1529_v31  ;;  %vm922_vm8 = vweird.f32 %v2004_v9 }
 0x10f   : > { %v895_v19 = vsel %vm894_vm3, %v1523_v18, %v891_v8  ;;  %v963_v20 = vmul.f32 %v1531_v13, %v1984_v55  ;;  %1534 = vrcp.f32 %v2008_v12  ;;  %vm968_vm6 = vweird.f32 %v1531_v13  ;;  %vm909_vm9 = vmor %vm907_vm1, %vm908_vm5 }
 0x110   : > { %v900_v23 = vsel %vm1995_vm15, %v899_v56, %v895_v19  ;;  %v904_v25 = vsub.f32 1.0, %v903_v14  ;;  %1536 = vpow2.f32 %v1366_v22  ;;  %v693_v37 = vadd.f32 %v669_v50, %v524_v29  ;;  %vm969_vm10 = vmor %vm967_vm2, %vm968_vm6 }
 0x111   : > { %v1029_v26 = vmul.f32 %v900_v23, %v1942_v46  ;;  %v964_v2 = vsub.f32 1.0, %v963_v20  ;;  %v974_v46 = vor.u32 1.1754944e-38, %v973_v39  ;;  %v926_v47 = vand.u32 2147483647, %v2004_v9 }
 0x112   : > { %v905_v32 = vmul.f32 %v1529_v31, %v904_v25  ;;  %1538 = vpow2.f32 %v1362_v1  ;;  %v928_v52 = vand.u32 2147483648, %v2004_v9  ;;  %v2045_v18 = vadd.f32 %v1890_v43, %v693_v37 }
 0x113   : > { %1045 = vst [vmem:[%s1914_s30 + $0x38] sm:$0xff] %v1029_v26  ;;  %v965_v36 = vmul.f32 %v1531_v13, %v964_v2  ;;  %v2048_v53 = vadd.f32 %v1890_v43, %v697_v41  ;;  %v986_v24 = vand.u32 2147483647, %v2008_v12  ;;  %v988_v3 = vand.u32 2147483648, %v2008_v12 }
 0x114   : > { %v1533_v38 = vpop.eup %1532  ;;  %v906_v40 = vadd.f32 %v1529_v31, %v905_v32  ;;  %v1363_v59 = vmul.f32 -1.442695, %v2045_v18  ;;  %vm927_vm14 = vcmp.eq.f32.partialorder %v926_v47, 8.507059e+37  ;;  %vm982_vm15 = vweird.f32 %v2008_v12 }
 0x115   : > { %v966_v44 = vadd.f32 %v1531_v13, %v965_v36  ;;  %v918_v45 = vmul.f32 %v1533_v38, %v2004_v9  ;;  %v1535_v48 = vpop.eup %1534  ;;  %vm923_vm11 = vweird.f32 %v1533_v38  ;;  %v1367_v0 = vmul.f32 -1.442695, %v2048_v53 }
 0x116   : > { %v910_v49 = vsel %vm909_vm9, %v1529_v31, %v906_v40  ;;  %v978_v57 = vmul.f32 %v1535_v48, %v2008_v12  ;;  %v1537_v60 = vpop.eup %1536  ;;  %1540 = vpow2.f32 %v1363_v59  ;;  %vm983_vm12 = vweird.f32 %v1535_v48  ;;  %vm924_vm13 = vmor %vm922_vm8, %vm923_vm11 }
 0x117   : > { %v915_v54 = vsel %vm2023_vm4, %v914_v27, %v910_v49  ;;  %v970_v61 = vsel %vm969_vm10, %v1531_v13, %v966_v44  ;;  %v919_v11 = vsub.f32 1.0, %v918_v45  ;;  %v780_v4 = vadd.f32 1.0, %v1537_v60  ;;  %vm984_vm0 = vmor %vm982_vm15, %vm983_vm12 }
 0x118   : > { %v1030_v55 = vmul.f32 %v915_v54, %v1952_v42  ;;  %v975_v58 = vsel %vm2029_vm7, %v974_v46, %v970_v61  ;;  %v979_v63 = vsub.f32 1.0, %v978_v57  ;;  %v1539_v42 = vpop.eup %1538  ;;  %1542 = vpow2.f32 %v1367_v0 }
 0x119   : > { %v1034_v43 = vmul.f32 %v975_v58, %v1955_v28  ;;  %v920_v62 = vmul.f32 %v1533_v38, %v919_v11  ;;  %v929_v28 = vor.u32 1.1754944e-38, %v928_v52  ;;  %v776_v7 = vadd.f32 1.0, %v1539_v42 }
 0x11a   : > { %1046 = vst [vmem:[%s1914_s30 + $0x40] sm:$0xff] %v1030_v55  ;;  %v980_v56 = vmul.f32 %v1535_v48, %v979_v63  ;;  %1544 = vrcp.f32 %v780_v4  ;;  %v989_v13 = vor.u32 1.1754944e-38, %v988_v3  ;;  %vm987_vm1 = vcmp.eq.f32.partialorder %v986_v24, 8.507059e+37 }
 0x11b   : > { %1050 = vst [vmem:[%s1914_s30 + $0x60] sm:$0xff] %v1034_v43  ;;  %v921_v6 = vadd.f32 %v1533_v38, %v920_v62  ;;  %1546 = vrcp.f32 %v776_v7  ;;  %v1001_v51 = vand.u32 2147483647, %v780_v4  ;;  %v1003_v50 = vand.u32 2147483648, %v780_v4 }
 0x11c   : > { %v981_v8 = vadd.f32 %v1535_v48, %v980_v56  ;;  %v1541_v9 = vpop.eup %1540  ;;  %v941_v27 = vand.u32 2147483647, %v776_v7  ;;  %vm997_vm4 = vweird.f32 %v780_v4  ;;  %vm937_vm5 = vweird.f32 %v776_v7 }
 0x11d   : > { %v925_v31 = vsel %vm924_vm13, %v1533_v38, %v921_v6  ;;  %v2070_v19 = vadd.f32 1.0, %v1541_v9  ;;  %vm1002_vm7 = vcmp.eq.f32.partialorder %v1001_v51, 8.507059e+37  ;;  %v1004_v36 = vor.u32 1.1754944e-38, %v1003_v50 }
 0x11e   : > { %v930_v10 = vsel %vm927_vm14, %v929_v28, %v925_v31  ;;  %v985_v15 = vsel %vm984_vm0, %v1535_v48, %v981_v8  ;;  %v1543_v16 = vpop.eup %1542  ;;  %vm942_vm8 = vcmp.eq.f32.partialorder %v941_v27, 8.507059e+37 }
 0x11f   : > { %v1031_v14 = vmul.f32 %v930_v10, %v1970_v34  ;;  %v990_v39 = vsel %vm987_vm1, %v989_v13, %v985_v15  ;;  %v2072_v22 = vadd.f32 1.0, %v1543_v16  ;;  %1548 = vrcp.f32 %v2070_v19 }
 0x120   : > { %v1035_v17 = vmul.f32 %v990_v39, %v1973_v35  ;;  %v1545_v20 = vpop.eup %1544  ;;  %v943_v35 = vand.u32 2147483648, %v776_v7  ;;  %v956_v45 = vand.u32 2147483647, %v2070_v19  ;;  %v958_v49 = vand.u32 2147483648, %v2070_v19 }
 0x121   : > { %1047 = vst [vmem:[%s1914_s30 + $0x48] sm:$0xff] %v1031_v14  ;;  %v993_v12 = vmul.f32 %v1545_v20, %v780_v4  ;;  %v1547_v23 = vpop.eup %1546  ;;  %1550 = vrcp.f32 %v2072_v22  ;;  %vm998_vm2 = vweird.f32 %v1545_v20  ;;  %v1018_v11 = vand.u32 2147483648, %v2072_v22 }
 0x122   : > { %1051 = vst [vmem:[%s1914_s30 + $0x68] sm:$0xff] %v1035_v17  ;;  %v933_v34 = vmul.f32 %v1547_v23, %v776_v7  ;;  %vm938_vm3 = vweird.f32 %v1547_v23  ;;  %vm999_vm6 = vmor %vm997_vm4, %vm998_vm2  ;;  %v944_v46 = vor.u32 1.1754944e-38, %v943_v35  ;;  %vm952_vm12 = vweird.f32 %v2070_v19 }
 0x123   : > { %v994_v25 = vsub.f32 1.0, %v993_v12  ;;  %vm939_vm9 = vmor %vm937_vm5, %vm938_vm3  ;;  %v959_v59 = vor.u32 1.1754944e-38, %v958_v49  ;;  %vm1012_vm14 = vweird.f32 %v2072_v22  ;;  %vm957_vm15 = vcmp.eq.f32.partialorder %v956_v45, 8.507059e+37 }
 0x124   : > { %v934_v26 = vsub.f32 1.0, %v933_v34  ;;  %v1019_v43 = vor.u32 1.1754944e-38, %v1018_v11 }
 0x125   : > { %v995_v2 = vmul.f32 %v1545_v20, %v994_v25  ;;  %v1549_v29 = vpop.eup %1548 }
 0x126   : > { %v935_v30 = vmul.f32 %v1547_v23, %v934_v26  ;;  %v948_v1 = vmul.f32 %v1549_v29, %v2070_v19  ;;  %vm953_vm10 = vweird.f32 %v1549_v29 }
 0x127   : > { %v996_v32 = vadd.f32 %v1545_v20, %v995_v2  ;;  %v1551_v33 = vpop.eup %1550  ;;  %vm954_vm13 = vmor %vm952_vm12, %vm953_vm10 }
 0x128   : > { %v936_v37 = vadd.f32 %v1547_v23, %v935_v30  ;;  %v1008_v40 = vmul.f32 %v1551_v33, %v2072_v22  ;;  %v949_v44 = vsub.f32 1.0, %v948_v1  ;;  %vm1013_vm11 = vweird.f32 %v1551_v33 }
 0x129   : > { %v1000_v38 = vsel %vm999_vm6, %v1545_v20, %v996_v32  ;;  %vm1014_vm0 = vmor %vm1012_vm14, %vm1013_vm11 }
 0x12a   : > { %v1005_v41 = vsel %vm1002_vm7, %v1004_v36, %v1000_v38  ;;  %v940_v47 = vsel %vm939_vm9, %v1547_v23, %v936_v37  ;;  %v1009_v52 = vsub.f32 1.0, %v1008_v40  ;;  %v950_v61 = vmul.f32 %v1549_v29, %v949_v44 }
 0x12b   : > { %v1036_v48 = vmul.f32 %v1005_v41, %v2000_v5  ;;  %v945_v54 = vsel %vm942_vm8, %v944_v46, %v940_v47  ;;  %v1016_v5 = vand.u32 2147483647, %v2072_v22 }
 0x12c   : > { %v1032_v57 = vmul.f32 %v945_v54, %v2018_v21  ;;  %v1010_v55 = vmul.f32 %v1551_v33, %v1009_v52  ;;  %v951_v58 = vadd.f32 %v1549_v29, %v950_v61 }
 0x12d   : > { %1052 = vst [vmem:[%s1914_s30 + $0x70] sm:$0xff] %v1036_v48  ;;  %vm1017_vm1 = vcmp.eq.f32.partialorder %v1016_v5, 8.507059e+37 }
 0x12e   : > { %1048 = vst [vmem:[%s1914_s30 + $0x50] sm:$0xff] %v1032_v57  ;;  %v1011_v60 = vadd.f32 %v1551_v33, %v1010_v55  ;;  %v955_v21 = vsel %vm954_vm13, %v1549_v29, %v951_v58 }
 0x12f   : > { %v960_v62 = vsel %vm957_vm15, %v959_v59, %v955_v21 }
 0x130   : > { %v1015_v63 = vsel %vm1014_vm0, %v1551_v33, %v1011_v60  ;;  %v1033_v0 = vmul.f32 %v960_v62, %v2045_v18 }
 0x131   : > { %v1020_v24 = vsel %vm1017_vm1, %v1019_v43, %v1015_v63 }
 0x132   : > { %v1037_v3 = vmul.f32 %v1020_v24, %v2048_v53  ;;  %1049 = vst [vmem:[%s1914_s30 + $0x58] sm:$0xff] %v1033_v0 }
 0x134   : > { %1053 = vst [vmem:[%s1914_s30 + $0x78] sm:$0xff] %v1037_v3 }
 0x135   : > { %1639 = shalt.err (!%p1636_p12)
}
 0x136   : > { %s1703_s6 = smov 128   ;;  %s1704_s22 = smov 8  }
 0x137   : > { %1416 = dma.vmem_to_hbm [thread:$0]  (%p1802_p3), %s1069_s24, 2048, %s1071_s25, %s1055_s26, %s1703_s6, %s1703_s6, %s1704_s22  }
 0x138 PF: > { %p1433_p13 = scmp.ge.s32.totalorder %s1698_s17, 2  ;;  %s1085_s27 = sand.u32 1, %s1678_s12  }
 0x139   : > { %s1086_s30 = scalar_lea.sflag [#allocation4], %s1085_s27 }
 0x13a   : > { %p1427_p0 = pnand %p1433_p13, %p1774_p6 }
 0x13c   : > { %p1428_p5 = pneg %p1427_p0 }
 0x13e   : > { %1673 = dma.done.wait (%p1428_p5), %s1086_s30, 2048  }
 0x13f   : > { %1675 = vsyncadd (%p1428_p5), %s1086_s30, 4294965248  ;;  %s20_s17 = sadd.s32 1, %s1698_s17   ;;  %s2147_s12 = smov %s1682_s13 }
 0x140   : > { %p17_p7 = scmp.ge.s32.totalorder %s20_s17, 6   ;;  %s2148_s13 = smov %s1686_s14 }
 0x141   : > { %s2149_s14 = smov %s1811_s11  ;;  %s2150_s15 = smov %s1694_s16 }
 0x142   : > { %s2151_s16 = smov %s2153_s5  ;;  %19 = sbr.rel (!%p17_p7) target bundleno = 7 (0x7), region = 89 }
 0x147   :  { %1092 = vsyncpa [#allocation3], 1 }
 0x148   :  { %1094 = vsyncpa [#allocation3 + $0x1], 1 }
 0x149   :  { %1095 = vsyncpa [#allocation6], 1 }
 0x14a   :  { %1096 = vsyncpa [#allocation4], 1 }
 0x14b   :  { %1098 = vsyncpa [#allocation4 + $0x1], 1 }

</bundles_post_ra>
